<compile_context>
chip_gen: v6e
topology: v6e:2x2x1
jax: 0.10.0
libtpu: 0.0.40
codegen_flags: <defaults>
</compile_context>

<pallas_src>
import functools
import math

import jax
import jax.numpy as jnp
from jax import lax
from jax.experimental import pallas as pl
from jax.experimental.pallas import tpu as pltpu

LN_EPS = 1e-5  # nn.LayerNorm default


def _round_up(x, m):
    return ((x + m - 1) // m) * m


def _detect_vmem():
    """Per-generation VMEM budget / scoped limit (bytes)."""
    cap = None
    try:
        info = pltpu.get_tpu_info()
        cap = getattr(info, "vmem_capacity_bytes", None)
    except Exception:
        cap = None
    if cap is None:
        try:
            kind = jax.devices()[0].device_kind.lower()
        except Exception:
            kind = ""
        # v7x has 64 MiB per TC; v5e/v6e have 128 MiB.
        cap = 64 * 1024 * 1024 if "v7" in kind else 128 * 1024 * 1024
    budget = min(int(cap * 0.60), 96 * 1024 * 1024)
    limit = min(int(cap * 0.80), 100 * 1024 * 1024)
    return budget, limit


VMEM_BUDGET_BYTES, VMEM_LIMIT_BYTES = _detect_vmem()


def _layernorm_f32(x_f32, gamma_f32, beta_f32, d_in):
    # E[x^2] - mean^2 formulation: zero-padded lanes contribute 0 to both sums,
    # so no lane mask is needed.  Padded lanes of the output are zeroed by the
    # zero-padded gamma/beta (and the zero-padded W rows).
    inv_n = 1.0 / d_in
    mean = jnp.sum(x_f32, axis=-1, keepdims=True) * inv_n
    ex2 = jnp.sum(x_f32 * x_f32, axis=-1, keepdims=True) * inv_n
    var = jnp.maximum(ex2 - mean * mean, 0.0)
    x_hat = (x_f32 - mean) * lax.rsqrt(var + LN_EPS)   # EUP rsqrt
    return x_hat * gamma_f32 + beta_f32


def _prenorm_kernel_resident(x_ref, gamma_ref, beta_ref, w_ref, b_ref, o_ref,
                             *, d_in):
    # Grid = (row_tiles,).  Full padded W is resident in VMEM (constant block
    # index -> DMA'd once) and reused for every row tile.
    y = _layernorm_f32(x_ref[...].astype(jnp.float32),
                       gamma_ref[...].astype(jnp.float32),
                       beta_ref[...].astype(jnp.float32), d_in)
    out = jnp.dot(y.astype(w_ref.dtype), w_ref[...],
                  preferred_element_type=jnp.float32)
    out = out + b_ref[...].astype(jnp.float32)
    o_ref[...] = out.astype(o_ref.dtype)


def _prenorm_kernel_tiled(x_ref, gamma_ref, beta_ref, w_ref, b_ref, o_ref,
                          y_ref, *, d_in):
    # Grid = (row_tiles, col_tiles).  LayerNorm runs once per row tile (column
    # index 0); the normalized tile is cached in VMEM scratch (matmul operand
    # dtype) and reused for every W column slice.  NOTE: this caching is only
    # valid because the column axis is the inner, sequential ("arbitrary")
    # grid axis per core — never mark it "parallel".
    @pl.when(pl.program_id(1) == 0)
    def _():
        y = _layernorm_f32(x_ref[...].astype(jnp.float32),
                           gamma_ref[...].astype(jnp.float32),
                           beta_ref[...].astype(jnp.float32), d_in)
        y_ref[...] = y.astype(y_ref.dtype)

    out = jnp.dot(y_ref[...], w_ref[...], preferred_element_type=jnp.float32)
    out = out + b_ref[...].astype(jnp.float32)
    o_ref[...] = out.astype(o_ref.dtype)


def _choose_tiles(rows, d_in_p, d_out_p, x_bytes, w_bytes, o_bytes):
    sub = max(8, 32 // x_bytes)              # sublane multiple for row axis
    rows_cap = _round_up(max(rows, 1), sub)

    row_cands = [c for c in (2048, 1024, 768, 512, 384, 256, 128, 64, 32, 16, 8)
                 if c % sub == 0 and c <= rows_cap]
    if rows_cap not in row_cands:
        row_cands = sorted(set(row_cands + [rows_cap]), reverse=True)

    def vmem_bytes(tr, tn, resident):
        w_buf = (1 if resident else 2) * d_in_p * tn * w_bytes
        y_scratch = 0 if resident else tr * d_in_p * w_bytes
        return (2 * tr * d_in_p * x_bytes        # x tile (double-buffered)
                + 2 * tr * tn * o_bytes          # out tile (double-buffered)
                + w_buf                          # W (resident or column slice)
                + 4 * (2 * d_in_p + tn) * 4      # gamma / beta / bias buffers
                + 3 * tr * d_in_p * 4            # LN f32 intermediates
                + tr * tn * 4                    # f32 matmul result pre-cast
                + y_scratch)

    # Preferred: whole padded W resident (single column tile) with a decent
    # row tile -> W read from HBM exactly once, no column axis at all.
    resident = None
    for tr in row_cands:
        if vmem_bytes(tr, d_out_p, True) <= VMEM_BUDGET_BYTES:
            resident = (tr, d_out_p, True)
            break
    if resident is not None and resident[0] >= min(256, rows_cap):
        return resident

    # Column-tiled W fallback.  tile_n >= 256 preferred (v6e/v7x MXUs are
    # 256 wide); 128 only as a last resort (fine on v5e's 128-wide MXU).
    n_cands = [c for c in (512, 256, 128) if c < d_out_p and d_out_p % c == 0]
    tiled = None
    for tn in n_cands:
        for tr in row_cands:
            if vmem_bytes(tr, tn, False) <= VMEM_BUDGET_BYTES:
                cand = (tr, tn, False)
                if tiled is None or (cand[0], cand[1]) > (tiled[0], tiled[1]):
                    tiled = cand
                break

    best = resident
    if tiled is not None and (best is None or tiled[0] > best[0]):
        best = tiled
    if best is None:
        # Nothing fits the budget even at minimal tiles: fall back to the
        # smallest tiles and let the compiler spill rather than fail here.
        # TODO(synk): add a K-tiled (reduction-axis) path with an f32
        # accumulator scratch for very large d_in.
        best = (sub, n_cands[-1] if n_cands else d_out_p, False)
    return best


@functools.partial(jax.jit, static_argnames=("use_bf16_matmul",))
def prenorm_linear(x, gamma, beta, w, b, use_bf16_matmul=False):
    """x: (..., d_in).  Returns fn(LayerNorm(x)) with fn(y) = y @ w + b."""
    *lead, d_in = x.shape
    d_out = w.shape[1]
    rows = math.prod(lead) if lead else 1

    # Opt-in bf16 matmul: halves W DMA bytes and ~3x MXU throughput on
    # v6e/v7x when the caller tolerates bf16 operands (f32 accumulation).
    if use_bf16_matmul:
        w = w.astype(jnp.bfloat16)

    d_in_p = _round_up(d_in, 128)
    d_out_p = _round_up(d_out, 128)

    x_bytes = x.dtype.itemsize
    w_bytes = w.dtype.itemsize
    tile_rows, tile_n, w_resident = _choose_tiles(
        rows, d_in_p, d_out_p, x_bytes, w_bytes, x_bytes)
    rows_p = _round_up(rows, tile_rows)

    # TODO(synk): for large unaligned row counts, mask the tail block in-kernel
    # instead of materializing a padded copy of x.
    x2d = x.reshape(rows, d_in)
    if rows_p != rows or d_in_p != d_in:
        x2d = jnp.pad(x2d, ((0, rows_p - rows), (0, d_in_p - d_in)))
    gamma_p = gamma.reshape(1, d_in)
    beta_p = beta.reshape(1, d_in)
    if d_in_p != d_in:
        gamma_p = jnp.pad(gamma_p, ((0, 0), (0, d_in_p - d_in)))
        beta_p = jnp.pad(beta_p, ((0, 0), (0, d_in_p - d_in)))
    w_p = w
    if d_in_p != d_in or d_out_p != d_out:
        w_p = jnp.pad(w, ((0, d_in_p - d_in), (0, d_out_p - d_out)))
    b_p = b.reshape(1, d_out)
    if d_out_p != d_out:
        b_p = jnp.pad(b_p, ((0, 0), (0, d_out_p - d_out)))

    if w_resident:
        kernel = functools.partial(_prenorm_kernel_resident, d_in=d_in)
        grid_spec = pltpu.PrefetchScalarGridSpec(
            num_scalar_prefetch=0,
            grid=(rows_p // tile_rows,),
            in_specs=[
                pl.BlockSpec((tile_rows, d_in_p), lambda i: (i, 0)),   # x
                pl.BlockSpec((1, d_in_p), lambda i: (0, 0)),           # gamma
                pl.BlockSpec((1, d_in_p), lambda i: (0, 0)),           # beta
                pl.BlockSpec((d_in_p, d_out_p), lambda i: (0, 0)),     # W resident
                pl.BlockSpec((1, d_out_p), lambda i: (0, 0)),          # bias
            ],
            out_specs=pl.BlockSpec((tile_rows, d_out_p), lambda i: (i, 0)),
        )
        dim_sems = ("parallel",)
    else:
        kernel = functools.partial(_prenorm_kernel_tiled, d_in=d_in)
        grid_spec = pltpu.PrefetchScalarGridSpec(
            num_scalar_prefetch=0,
            grid=(rows_p // tile_rows, d_out_p // tile_n),
            in_specs=[
                pl.BlockSpec((tile_rows, d_in_p), lambda i, j: (i, 0)),  # x
                pl.BlockSpec((1, d_in_p), lambda i, j: (0, 0)),          # gamma
                pl.BlockSpec((1, d_in_p), lambda i, j: (0, 0)),          # beta
                pl.BlockSpec((d_in_p, tile_n), lambda i, j: (0, j)),     # W slice
                pl.BlockSpec((1, tile_n), lambda i, j: (0, j)),          # bias
            ],
            out_specs=pl.BlockSpec((tile_rows, tile_n), lambda i, j: (i, j)),
            scratch_shapes=[pltpu.VMEM((tile_rows, d_in_p), w.dtype)],
        )
        # Column axis MUST stay sequential ("arbitrary"): the y-scratch caching
        # depends on it; row axis "parallel" lets v7x's two TCs shard rows.
        dim_sems = ("parallel", "arbitrary")

    out2d = pl.pallas_call(
        kernel,
        out_shape=jax.ShapeDtypeStruct((rows_p, d_out_p), x.dtype),
        grid_spec=grid_spec,
        compiler_params=pltpu.CompilerParams(
            dimension_semantics=dim_sems,
            vmem_limit_bytes=VMEM_LIMIT_BYTES),
    )(x2d, gamma_p, beta_p, w_p, b_p)

    if rows_p != rows or d_out_p != d_out:
        out2d = out2d[:rows, :d_out]
    return out2d.reshape(*lead, d_out)


def _reference(x, gamma, beta, w, b):
    xf = x.astype(jnp.float32)
    mean = jnp.mean(xf, axis=-1, keepdims=True)
    var = jnp.mean((xf - mean) ** 2, axis=-1, keepdims=True)
    y = (xf - mean) / jnp.sqrt(var + LN_EPS) * gamma + beta
    return (y @ w.astype(jnp.float32) + b).astype(x.dtype)


if __name__ == "__main__":
    batch, seq, dim = 2, 8, 32

    key = jax.random.PRNGKey(0)
    kx, kw, kb = jax.random.split(key, 3)

    x = jax.random.normal(kx, (batch, seq, dim), dtype=jnp.float32)

    # LayerNorm params: PyTorch default init (weight=1, bias=0).
    gamma = jnp.ones((dim,), dtype=jnp.float32)
    beta = jnp.zeros((dim,), dtype=jnp.float32)

    # fn = Linear(dim, dim): deterministic synthetic init.
    w = jax.random.normal(kw, (dim, dim), dtype=jnp.float32) * (1.0 / jnp.sqrt(dim))
    b = jax.random.normal(kb, (dim,), dtype=jnp.float32) * 0.01

    out = prenorm_linear(x, gamma, beta, w, b)
    out = jax.block_until_ready(out)

    ref = _reference(x, gamma, beta, w, b)
    assert out.shape == (batch, seq, dim)
    assert jnp.allclose(out, ref, atol=1e-4, rtol=1e-4), "mismatch vs reference"

    # TODO(synk): the `dim is None` branch (F.normalize, no affine) and arbitrary
    # user-supplied `fn` are not representable generically; fn is fixed to Linear.
    print("KERNEL_OK")
</pallas_src>

<mosaic_0001>
module attributes {stable_mosaic.version = 11 : i64} {
  func.func @_prenorm_kernel_resident(%arg0: i32, %arg1: memref<16x128xf32, #tpu.memory_space<vmem>>, %arg2: memref<1x128xf32, #tpu.memory_space<vmem>>, %arg3: memref<1x128xf32, #tpu.memory_space<vmem>>, %arg4: memref<128x128xf32, #tpu.memory_space<vmem>>, %arg5: memref<1x128xf32, #tpu.memory_space<vmem>>, %arg6: memref<16x128xf32, #tpu.memory_space<vmem>>) attributes {dimension_semantics = [#tpu.dimension_semantics<parallel>], iteration_bounds = array<i64: 1>, scalar_prefetch = 0 : i64, scratch_operands = 0 : i64, tpu.core_type = #tpu.core_type<tc>, window_params = [{transform_indices = @transform_0, window_bounds = array<i64: 16, 128>}, {pipeline_mode = #tpu.pipeline_mode<synchronous>, transform_indices = @transform_1, window_bounds = array<i64: 1, 128>}, {pipeline_mode = #tpu.pipeline_mode<synchronous>, transform_indices = @transform_2, window_bounds = array<i64: 1, 128>}, {pipeline_mode = #tpu.pipeline_mode<synchronous>, transform_indices = @transform_3, window_bounds = array<i64: 128, 128>}, {pipeline_mode = #tpu.pipeline_mode<synchronous>, transform_indices = @transform_4, window_bounds = array<i64: 1, 128>}, {transform_indices = @transform_5, window_bounds = array<i64: 16, 128>}]} {
    %c0 = arith.constant 0 : index
    %c0_0 = arith.constant 0 : index
    %0 = vector.load %arg1[%c0, %c0_0] : memref<16x128xf32, #tpu.memory_space<vmem>>, vector<16x128xf32>
    %c0_1 = arith.constant 0 : index
    %c0_2 = arith.constant 0 : index
    %1 = vector.load %arg2[%c0_1, %c0_2] : memref<1x128xf32, #tpu.memory_space<vmem>>, vector<1x128xf32>
    %c0_3 = arith.constant 0 : index
    %c0_4 = arith.constant 0 : index
    %2 = vector.load %arg3[%c0_3, %c0_4] : memref<1x128xf32, #tpu.memory_space<vmem>>, vector<1x128xf32>
    %cst = arith.constant dense<0.000000e+00> : vector<16xf32>
    %3 = vector.multi_reduction <add>, %0, %cst [1] : vector<16x128xf32> to vector<16xf32>
    %4 = vector.shape_cast %3 : vector<16xf32> to vector<16x1xf32>
    %cst_5 = arith.constant 3.125000e-02 : f32
    %5 = vector.broadcast %cst_5 : f32 to vector<16x1xf32>
    %6 = arith.mulf %4, %5 : vector<16x1xf32>
    %7 = arith.mulf %0, %0 : vector<16x128xf32>
    %cst_6 = arith.constant dense<0.000000e+00> : vector<16xf32>
    %8 = vector.multi_reduction <add>, %7, %cst_6 [1] : vector<16x128xf32> to vector<16xf32>
    %9 = vector.shape_cast %8 : vector<16xf32> to vector<16x1xf32>
    %cst_7 = arith.constant 3.125000e-02 : f32
    %10 = vector.broadcast %cst_7 : f32 to vector<16x1xf32>
    %11 = arith.mulf %9, %10 : vector<16x1xf32>
    %12 = arith.mulf %6, %6 : vector<16x1xf32>
    %13 = arith.subf %11, %12 : vector<16x1xf32>
    %cst_8 = arith.constant 0.000000e+00 : f32
    %14 = vector.broadcast %cst_8 : f32 to vector<16x1xf32>
    %15 = arith.maximumf %13, %14 : vector<16x1xf32>
    %16 = vector.broadcast %6 : vector<16x1xf32> to vector<16x128xf32>
    %17 = arith.subf %0, %16 : vector<16x128xf32>
    %cst_9 = arith.constant 9.99999974E-6 : f32
    %18 = vector.broadcast %cst_9 : f32 to vector<16x1xf32>
    %19 = arith.addf %15, %18 : vector<16x1xf32>
    %20 = math.rsqrt %19 : vector<16x1xf32>
    %21 = vector.broadcast %20 : vector<16x1xf32> to vector<16x128xf32>
    %22 = arith.mulf %17, %21 : vector<16x128xf32>
    %23 = vector.broadcast %1 : vector<1x128xf32> to vector<16x128xf32>
    %24 = arith.mulf %22, %23 : vector<16x128xf32>
    %25 = vector.broadcast %2 : vector<1x128xf32> to vector<16x128xf32>
    %26 = arith.addf %24, %25 : vector<16x128xf32>
    %c0_10 = arith.constant 0 : index
    %c0_11 = arith.constant 0 : index
    %27 = vector.load %arg4[%c0_10, %c0_11] : memref<128x128xf32, #tpu.memory_space<vmem>>, vector<128x128xf32>
    %cst_12 = arith.constant dense<0.000000e+00> : vector<16x128xf32>
    %28 = tpu.matmul %26, %27, %cst_12 {dimension_numbers = #tpu.dot_dimension_numbers<[1], [0], [0], [1], [0, 0, 1, 1], [], []>} : vector<16x128xf32>, vector<128x128xf32>, vector<16x128xf32> -> vector<16x128xf32>
    %c0_13 = arith.constant 0 : index
    %c0_14 = arith.constant 0 : index
    %29 = vector.load %arg5[%c0_13, %c0_14] : memref<1x128xf32, #tpu.memory_space<vmem>>, vector<1x128xf32>
    %30 = vector.broadcast %29 : vector<1x128xf32> to vector<16x128xf32>
    %31 = arith.addf %28, %30 : vector<16x128xf32>
    %c0_15 = arith.constant 0 : index
    %c0_16 = arith.constant 0 : index
    %32 = vector.load %arg6[%c0_15, %c0_16] : memref<16x128xf32, #tpu.memory_space<vmem>>, vector<16x128xf32>
    tpu.vector_store %arg6[%c0_15, %c0_16], %31 {strides = array<i32>} : memref<16x128xf32, #tpu.memory_space<vmem>>, vector<16x128xf32>,
    return
  }
  func.func @transform_0(%arg0: i32) -> (i32, i32) {
    %c0_i32 = arith.constant 0 : i32
    %c0_i32_0 = arith.constant 0 : i32
    return %arg0, %c0_i32 : i32, i32
  }
  func.func @transform_1(%arg0: i32) -> (i32, i32) {
    %c0_i32 = arith.constant 0 : i32
    %c0_i32_0 = arith.constant 0 : i32
    %c0_i32_1 = arith.constant 0 : i32
    return %c0_i32, %c0_i32_0 : i32, i32
  }
  func.func @transform_2(%arg0: i32) -> (i32, i32) {
    %c0_i32 = arith.constant 0 : i32
    %c0_i32_0 = arith.constant 0 : i32
    %c0_i32_1 = arith.constant 0 : i32
    return %c0_i32, %c0_i32_0 : i32, i32
  }
  func.func @transform_3(%arg0: i32) -> (i32, i32) {
    %c0_i32 = arith.constant 0 : i32
    %c0_i32_0 = arith.constant 0 : i32
    %c0_i32_1 = arith.constant 0 : i32
    return %c0_i32, %c0_i32_0 : i32, i32
  }
  func.func @transform_4(%arg0: i32) -> (i32, i32) {
    %c0_i32 = arith.constant 0 : i32
    %c0_i32_0 = arith.constant 0 : i32
    %c0_i32_1 = arith.constant 0 : i32
    return %c0_i32, %c0_i32_0 : i32, i32
  }
  func.func @transform_5(%arg0: i32) -> (i32, i32) {
    %c0_i32 = arith.constant 0 : i32
    %c0_i32_0 = arith.constant 0 : i32
    return %arg0, %c0_i32 : i32, i32
  }
}

</mosaic_0001>

<bundles_post_ra>
// kernel: prenorm_linear.1
= control target key start
LH: loop header
LB: loop body
LE: loop exit
PB: predicated region body
PF: predicated region fallthrough
CT: control target
= control target key end

     0   :  { %s343_s0 = inlined_call_operand.vmem [shape: f32[16,128], index: 0, kind: input, shape index: {}]   ;;  %s344_s3 = inlined_call_operand.vmem [shape: f32[128,128], index: 3, kind: input, shape index: {}]   ;;  %s345_s1 = inlined_call_operand.vmem [shape: f32[1,128], index: 1, kind: input, shape index: {}]   ;;  %s346_s2 = inlined_call_operand.vmem [shape: f32[1,128], index: 2, kind: input, shape index: {}]   ;;  %s347_s4 = inlined_call_operand.vmem [shape: f32[1,128], index: 4, kind: input, shape index: {}]   ;;  %s348_s5 = inlined_call_operand.vmem [shape: f32[16,128], index: 5, kind: output, shape index: {}]  }
   0x1   :  { %v265_v0 = vld [vmem:[%s343_s0] sm:$0xff]  ;;  %v270_v1 = vld [vmem:[%s343_s0 + $0x8] sm:$0xff]  ;;  %v83_v4 = vld [vmem:[%s344_s3 + $0x78] sm:$0xff] }
   0x2   :  { %24 = vadd.xlane.f32.xlu0 %v265_v0  ;;  %v30_v2 = vmul.f32 %v265_v0, %v265_v0  ;;  %v31_v3 = vmul.f32 %v270_v1, %v270_v1  ;;  %193 = vmatprep.subr.mxu0 %v83_v4  ;;  %v82_v5 = vld [vmem:[%s344_s3 + $0x70] sm:$0xff]  ;;  %v81_v6 = vld [vmem:[%s344_s3 + $0x68] sm:$0xff]  ;;  %v80_v7 = vld [vmem:[%s344_s3 + $0x60] sm:$0xff] }
   0x3   :  { %194 = vmatpush3.msra.mxu0 %v83_v4  ;;  %v79_v8 = vld [vmem:[%s344_s3 + $0x58] sm:$0xff]  ;;  %v78_v9 = vld [vmem:[%s344_s3 + $0x50] sm:$0xff]  ;;  %v77_v10 = vld [vmem:[%s344_s3 + $0x48] sm:$0xff] }
   0x4   :  { %32 = vadd.xlane.f32.xlu1 %v30_v2  ;;  %195 = vmatprep.subr.mxu0 %v82_v5  ;;  %v76_v11 = vld [vmem:[%s344_s3 + $0x40] sm:$0xff]  ;;  %v75_v12 = vld [vmem:[%s344_s3 + $0x38] sm:$0xff]  ;;  %v74_v13 = vld [vmem:[%s344_s3 + $0x30] sm:$0xff] }
   0x5   :  { %196 = vmatpush3.msra.mxu0 %v82_v5  ;;  %v73_v14 = vld [vmem:[%s344_s3 + $0x28] sm:$0xff]  ;;  %v72_v15 = vld [vmem:[%s344_s3 + $0x20] sm:$0xff]  ;;  %v71_v16 = vld [vmem:[%s344_s3 + $0x18] sm:$0xff] }
   0x6   :  { %26 = vadd.xlane.f32.xlu0 %v270_v1  ;;  %197 = vmatprep.subr.mxu0 %v81_v6  ;;  %v70_v17 = vld [vmem:[%s344_s3 + $0x10] sm:$0xff]  ;;  %v69_v18 = vld [vmem:[%s344_s3 + $0x8] sm:$0xff]  ;;  %v68_v19 = vld [vmem:[%s344_s3] sm:$0xff] }
   0x7   :  { %198 = vmatpush3.msra.mxu0 %v81_v6  ;;  %v172_v38 = vld [vmem:[%s345_s1] ss:$0 sm:$0xff] }
   0x8   :  { %34 = vadd.xlane.f32.xlu1 %v31_v3  ;;  %199 = vmatprep.subr.mxu0 %v80_v7  ;;  %v173_v40 = vld [vmem:[%s346_s2] ss:$0 sm:$0xff] }
   0x9   :  { %200 = vmatpush3.msra.mxu0 %v80_v7  ;;  %v174_v48 = vld [vmem:[%s347_s4] ss:$0 sm:$0xff] }
   0xa   :  { %201 = vmatprep.subr.mxu0 %v79_v8 }
   0xb   :  { %202 = vmatpush3.msra.mxu0 %v79_v8 }
   0xc   :  { %203 = vmatprep.subr.mxu0 %v78_v9 }
   0xd   :  { %204 = vmatpush3.msra.mxu0 %v78_v9 }
   0xe   :  { %205 = vmatprep.subr.mxu0 %v77_v10 }
   0xf   :  { %206 = vmatpush3.msra.mxu0 %v77_v10 }
  0x10   :  { %207 = vmatprep.subr.mxu0 %v76_v11 }
  0x11   :  { %208 = vmatpush3.msra.mxu0 %v76_v11 }
  0x12   :  { %209 = vmatprep.subr.mxu0 %v75_v12 }
  0x13   :  { %210 = vmatpush3.msra.mxu0 %v75_v12 }
  0x14   :  { %211 = vmatprep.subr.mxu0 %v74_v13 }
  0x15   :  { %212 = vmatpush3.msra.mxu0 %v74_v13 }
  0x16   :  { %213 = vmatprep.subr.mxu0 %v73_v14 }
  0x17   :  { %214 = vmatpush3.msra.mxu0 %v73_v14 }
  0x18   :  { %215 = vmatprep.subr.mxu0 %v72_v15 }
  0x19   :  { %216 = vmatpush3.msra.mxu0 %v72_v15 }
  0x1a   :  { %217 = vmatprep.subr.mxu0 %v71_v16 }
  0x1b   :  { %218 = vmatpush3.msra.mxu0 %v71_v16 }
  0x1c   :  { %219 = vmatprep.subr.mxu0 %v70_v17 }
  0x1d   :  { %220 = vmatpush3.msra.mxu0 %v70_v17 }
  0x1e   :  { %221 = vmatprep.subr.mxu0 %v69_v18 }
  0x1f   :  { %222 = vmatpush3.msra.mxu0 %v69_v18 }
  0x20   :  { %223 = vmatprep.subr.mxu0 %v68_v19 }
  0x21   :  { %224 = vmatpush3.msra.mxu0 %v68_v19 }
  0x8b   :  { %v25_v20 = vpop.xlane.xlu0 %24 }
  0x8c   :  { %v28_v21 = vmul.f32 0.03125, %v25_v20 }
  0x8d   :  { %v33_v22 = vpop.xlane.xlu1 %32 }
  0x8e   :  { %v38_v23 = vmul.f32 %v28_v21, %v28_v21  ;;  %v36_v24 = vmul.f32 0.03125, %v33_v22  ;;  %v44_v36 = vsub.f32 %v265_v0, %v28_v21 }
  0x8f   :  { %v27_v25 = vpop.xlane.xlu0 %26 }
  0x90   :  { %v40_v26 = vsub.f32 %v36_v24, %v38_v23  ;;  %v29_v27 = vmul.f32 0.03125, %v27_v25 }
  0x91   :  { %v35_v28 = vpop.xlane.xlu1 %34 }
  0x92   :  { %v42_v29 = vmax.f32 %v40_v26, 0.0  ;;  %v39_v30 = vmul.f32 %v29_v27, %v29_v27  ;;  %v37_v31 = vmul.f32 0.03125, %v35_v28  ;;  %v45_v41 = vsub.f32 %v270_v1, %v29_v27 }
  0x94   :  { %v46_v32 = vadd.f32 1e-05, %v42_v29  ;;  %v41_v33 = vsub.f32 %v37_v31, %v39_v30 }
  0x96   :  { %228 = vrsqrt.f32 %v46_v32  ;;  %v43_v34 = vmax.f32 %v41_v33, 0.0 }
  0x98   :  { %v47_v35 = vadd.f32 1e-05, %v43_v34 }
  0x9a   :  { %230 = vrsqrt.f32 %v47_v35 }
  0xa3   :  { %v229_v37 = vpop.eup %228 }
  0xa4   :  { %v50_v39 = vmul.f32 %v229_v37, %v44_v36 }
  0xa6   :  { %v58_v42 = vmul.f32 %v172_v38, %v50_v39 }
  0xa7   :  { %v231_v43 = vpop.eup %230 }
  0xa8   :  { %v51_v44 = vmul.f32 %v231_v43, %v45_v41  ;;  %v66_v45 = vadd.f32 %v173_v40, %v58_v42 }
  0xaa   :  { %v59_v46 = vmul.f32 %v172_v38, %v51_v44  ;;  %225 = vmatprep.mubr.f32.mxu0 %v66_v45 }
  0xac   :  { %v67_v47 = vadd.f32 %v173_v40, %v59_v46 }
  0xae   :  { %226 = vmatmul.mubr.f32.vlgmr.msra.gmra.mxu0 %v67_v47 }
 0x16e   :  { %v227_v49 = vpop.f32.mrf.mxu0 }
 0x16f   :  { %v163_v50 = vadd.f32 %v227_v49, %v174_v48 }
 0x170   :  { %v157_v51 = vpop.f32.mrf.mxu0 }
 0x171   :  { %167 = vst [vmem:[%s348_s5 + $0x8] sm:$0xff] %v163_v50  ;;  %v158_v52 = vadd.f32 %v174_v48, %v157_v51 }
 0x173   :  { %166 = vst [vmem:[%s348_s5] sm:$0xff] %v158_v52 }

</bundles_post_ra>
